<compile_context>
chip_gen: v7x
topology: tpu7x:2x2x1
jax: 0.10.0
libtpu: 0.0.40
codegen_flags: <defaults>
</compile_context>

<pallas_src>
import math

import jax
import jax.numpy as jnp
from jax.experimental import pallas as pl
from jax.experimental.pallas import tpu as pltpu

_HALF_PI = math.pi / 2.0
_LANE = 128


def _cdiv(a: int, b: int) -> int:
    return -(-a // b)


def _round_up(x: int, m: int) -> int:
    return _cdiv(x, m) * m


# --------------------------------------------------------------------------- #
# Kernel: one (tile_r, width) tile of sin(row * a + b) with per-lane a, b.
# --------------------------------------------------------------------------- #
def _pe_kernel(params_ref, o_ref):
    tile_r = o_ref.shape[0]
    a = params_ref[0:1, :]                                  # (1, width) per-lane multiplier
    b = params_ref[1:2, :]                                  # (1, width) per-lane offset
    r0 = (pl.program_id(0) * tile_r).astype(jnp.float32)    # absolute first row of this tile
    off = r0 * a + b                                        # fold row0 into a (1, width) offset
    r = jax.lax.broadcasted_iota(jnp.int32, o_ref.shape, 0).astype(jnp.float32)
    # Exactly one mul + one add + one transcendental per element; cast on store.
    o_ref[...] = jnp.sin(r * a + off).astype(o_ref.dtype)


# --------------------------------------------------------------------------- #
# Generation-aware tile sizing and launch
# --------------------------------------------------------------------------- #
def _vmem_budget():
    """Return (per-output-buffer byte target, scoped vmem_limit_bytes)."""
    cap = None
    try:
        cap = getattr(pltpu.get_tpu_info(), "vmem_capacity_bytes", None)
    except Exception:
        cap = None
    if cap is None:
        cap = 64 << 20                   # conservative: assume the 64 MiB-VMEM part (v7x)
    if cap >= (96 << 20):                # v5e / v6e: 128 MiB physical VMEM
        return 20 << 20, 64 << 20
    # v7x: 2 x 12 MiB double-buffered output + params + headroom stays < 32 MiB
    return 12 << 20, 32 << 20


def _pick_tile(total_rows, row_bytes, per_buffer_bytes, align, min_steps=4):
    """Balanced row tiling: (tile rows, grid steps, padded total rows)."""
    blocks = _cdiv(max(total_rows, 1), align)                     # units of `align` rows
    max_blocks = max(1, per_buffer_bytes // (row_bytes * align))  # VMEM byte budget
    # Keep >= min_steps grid steps when the table is big enough, so the
    # "parallel" grid axis can be sharded across both v7x TensorCores.
    max_blocks = max(1, min(max_blocks, _cdiv(blocks, min_steps)))
    n_steps = _cdiv(blocks, max_blocks)
    tile_blocks = _cdiv(blocks, n_steps)        # balanced: padding <= (n_steps-1)*align rows
    tile_r = tile_blocks * align
    return tile_r, n_steps, tile_r * n_steps


def _launch(params, total_rows, width, dtype):
    itemsize = jnp.dtype(dtype).itemsize
    align = 8 if itemsize >= 4 else 32 // itemsize        # sublane packing for narrow dtypes
    per_buf, vmem_limit = _vmem_budget()
    tile_r, n_steps, rows_padded = _pick_tile(total_rows, width * itemsize, per_buf, align)
    return pl.pallas_call(
        _pe_kernel,
        out_shape=jax.ShapeDtypeStruct((rows_padded, width), dtype),
        grid=(n_steps,),
        # Tiny per-lane params: constant block index -> stays VMEM-resident.
        in_specs=[pl.BlockSpec((2, width), lambda i: (0, 0))],
        out_specs=pl.BlockSpec((tile_r, width), lambda i: (i, 0)),
        compiler_params=pltpu.CompilerParams(
            dimension_semantics=("parallel",),
            vmem_limit_bytes=vmem_limit,
        ),
    )(params)


# --------------------------------------------------------------------------- #
# Builders (run once at module init)
# --------------------------------------------------------------------------- #
def _build_rows(max_len, d_model, dtype):
    """General path: lane-padded (max_len, round_up(d_model, 128)) slab, sliced."""
    d_pad = _round_up(d_model, _LANE)
    col = jnp.arange(d_pad, dtype=jnp.int32)
    parity = col % 2
    two_i = (col - parity).astype(jnp.float32)
    valid = col < d_model
    # Frequency term with the same pow formulation as the PyTorch reference.
    scale = jnp.where(valid, 1.0 / (10000.0 ** (two_i / d_model)), 0.0)
    phase = jnp.where(valid, parity.astype(jnp.float32) * _HALF_PI, 0.0)
    params = jnp.stack([scale, phase]).astype(jnp.float32)        # (2, d_pad)
    tab = _launch(params, max_len, d_pad, dtype)
    return tab[:max_len, :d_model]


def _build_flat(max_len, d_model, dtype):
    """Lane-dense path for d_model < 128 dividing 128: pack rpl rows per 128 lanes."""
    rpl = _LANE // d_model
    flat_rows = _cdiv(max_len, rpl)
    fl = jnp.arange(_LANE, dtype=jnp.int32)
    col = fl % d_model
    parity = col % 2
    two_i = (col - parity).astype(jnp.float32)
    scale = 1.0 / (10000.0 ** (two_i / d_model))
    phase = parity.astype(jnp.float32) * _HALF_PI
    sub = (fl // d_model).astype(jnp.float32)         # intra-flat-row position offset
    a = scale * float(rpl)                            # multiplier of the flat-row index
    b = sub * scale + phase                           # offset at flat row 0
    params = jnp.stack([a, b]).astype(jnp.float32)    # (2, 128)
    tab = _launch(params, flat_rows, _LANE, dtype)
    # Row-major flatten of the lane-dense slab is exactly flat-index order.
    return tab.reshape(-1)[: max_len * d_model].reshape(max_len, d_model)


def build_positional_encoding(max_len, d_model, dtype=jnp.float32):
    """Compute the (max_len, d_model) sinusoidal table with a Pallas kernel."""
    if d_model < _LANE and _LANE % d_model == 0:
        return _build_flat(max_len, d_model, dtype)   # lane-dense store path
    return _build_rows(max_len, d_model, dtype)


# --------------------------------------------------------------------------- #
# Module-equivalent wrapper
# --------------------------------------------------------------------------- #
class PositionalEmbedding:
    """JAX/Pallas equivalent of the PyTorch PositionalEmbedding module."""

    def __init__(self, d_model: int, max_len: int, dtype=jnp.float32):
        # Pass dtype=jnp.bfloat16 when downstream consumers are bf16: halves the
        # HBM writeback of the one-time build and the hot-path read bandwidth.
        self.d_model = d_model
        self.max_len = max_len
        self.encoder = jax.block_until_ready(
            build_positional_encoding(max_len, d_model, dtype))

    def __call__(self, x):
        seq_len = x.shape[1]
        return self.encoder[:seq_len, :]    # pure slice; no kernel on the hot path

    forward = __call__


# --------------------------------------------------------------------------- #
# Pure-JAX reference mirroring the PyTorch __init__
# --------------------------------------------------------------------------- #
def _reference_encoding(max_len, d_model):
    enc = jnp.zeros((max_len, d_model), dtype=jnp.float32)
    pos = jnp.arange(0, max_len, dtype=jnp.float32)[:, None]
    _2i = jnp.arange(0, d_model, 2, dtype=jnp.float32)
    enc = enc.at[:, 0::2].set(jnp.sin(pos / 10000.0 ** (_2i / d_model)))
    enc = enc.at[:, 1::2].set(jnp.cos(pos / 10000.0 ** (_2i / d_model)))
    return enc


if __name__ == "__main__":
    key = jax.random.PRNGKey(0)

    # Config 1: lane-dense flat path (d_model < 128 dividing 128).
    d_model, max_len, batch, seq_len = 32, 16, 2, 8
    x = jax.random.normal(key, (batch, seq_len, d_model), dtype=jnp.float32)
    pe = PositionalEmbedding(d_model=d_model, max_len=max_len)
    out = jax.block_until_ready(pe(x))
    ref = _reference_encoding(max_len, d_model)[:seq_len, :]
    assert out.shape == (seq_len, d_model), out.shape
    assert out.dtype == jnp.float32, out.dtype
    assert jnp.allclose(out, ref, atol=1e-5, rtol=1e-5), "flat path mismatch"

    # Config 2: row path, d_model a multiple of 128.
    d2, m2, s2 = 128, 40, 24
    pe2 = PositionalEmbedding(d_model=d2, max_len=m2)
    out2 = jax.block_until_ready(pe2(jnp.zeros((2, s2, d2), jnp.float32)))
    ref2 = _reference_encoding(m2, d2)[:s2, :]
    assert out2.shape == (s2, d2)
    assert jnp.allclose(out2, ref2, atol=1e-5, rtol=1e-5), "row path mismatch"

    # Config 3: row path with lane padding (d_model not a multiple of 128).
    d3, m3, s3 = 96, 24, 8
    pe3 = PositionalEmbedding(d_model=d3, max_len=m3)
    out3 = jax.block_until_ready(pe3(jnp.zeros((2, s3, d3), jnp.float32)))
    ref3 = _reference_encoding(m3, d3)[:s3, :]
    assert out3.shape == (s3, d3)
    assert jnp.allclose(out3, ref3, atol=1e-5, rtol=1e-5), "lane-padded path mismatch"

    # Config 4: bf16 table (halves HBM writeback and hot-path read bandwidth).
    d4, m4 = 64, 32
    pe4 = PositionalEmbedding(d_model=d4, max_len=m4, dtype=jnp.bfloat16)
    out4 = jax.block_until_ready(pe4(jnp.zeros((2, 16, d4), jnp.float32)))
    ref4 = _reference_encoding(m4, d4)[:16, :]
    assert out4.dtype == jnp.bfloat16
    assert jnp.max(jnp.abs(out4.astype(jnp.float32) - ref4)) < 8e-3, "bf16 path mismatch"

    print("KERNEL_OK")
</pallas_src>

<mosaic_0001>
module attributes {stable_mosaic.version = 11 : i64} {
  func.func @_pe_kernel(%arg0: i32, %arg1: memref<2x128xf32, #tpu.memory_space<vmem>>, %arg2: memref<8x128xf32, #tpu.memory_space<vmem>>) attributes {dimension_semantics = [#tpu.dimension_semantics<parallel>], iteration_bounds = array<i64: 1>, scalar_prefetch = 0 : i64, scratch_operands = 0 : i64, tpu.core_type = #tpu.core_type<tc>, window_params = [{pipeline_mode = #tpu.pipeline_mode<synchronous>, transform_indices = @transform_0, window_bounds = array<i64: 2, 128>}, {transform_indices = @transform_1, window_bounds = array<i64: 8, 128>}]} {
    %c0 = arith.constant 0 : index
    %c0_0 = arith.constant 0 : index
    %0 = vector.load %arg1[%c0, %c0_0] : memref<2x128xf32, #tpu.memory_space<vmem>>, vector<1x128xf32>
    %c1 = arith.constant 1 : index
    %c0_1 = arith.constant 0 : index
    %1 = vector.load %arg1[%c1, %c0_1] : memref<2x128xf32, #tpu.memory_space<vmem>>, vector<1x128xf32>
    %c8_i32 = arith.constant 8 : i32
    %2 = arith.muli %arg0, %c8_i32 : i32
    %3 = arith.sitofp %2 : i32 to f32
    %4 = vector.broadcast %3 : f32 to vector<1x128xf32>
    %5 = arith.mulf %4, %0 : vector<1x128xf32>
    %6 = arith.addf %5, %1 : vector<1x128xf32>
    %7 = tpu.iota {dimensions = array<i32: 0>} : vector<8x128xi32>
    %8 = arith.sitofp %7 : vector<8x128xi32> to vector<8x128xf32>
    %9 = vector.broadcast %0 : vector<1x128xf32> to vector<8x128xf32>
    %10 = arith.mulf %8, %9 : vector<8x128xf32>
    %11 = vector.broadcast %6 : vector<1x128xf32> to vector<8x128xf32>
    %12 = arith.addf %10, %11 : vector<8x128xf32>
    %13 = math.sin %12 : vector<8x128xf32>
    %c0_2 = arith.constant 0 : index
    %c0_3 = arith.constant 0 : index
    %14 = vector.load %arg2[%c0_2, %c0_3] : memref<8x128xf32, #tpu.memory_space<vmem>>, vector<8x128xf32>
    tpu.vector_store %arg2[%c0_2, %c0_3], %13 {strides = array<i32>} : memref<8x128xf32, #tpu.memory_space<vmem>>, vector<8x128xf32>,
    return
  }
  func.func @transform_0(%arg0: i32) -> (i32, i32) {
    %c0_i32 = arith.constant 0 : i32
    %c0_i32_0 = arith.constant 0 : i32
    %c0_i32_1 = arith.constant 0 : i32
    return %c0_i32, %c0_i32_0 : i32, i32
  }
  func.func @transform_1(%arg0: i32) -> (i32, i32) {
    %c0_i32 = arith.constant 0 : i32
    %c0_i32_0 = arith.constant 0 : i32
    return %arg0, %c0_i32 : i32, i32
  }
}

</mosaic_0001>

<bundles_post_ra>
// kernel: tpu_custom_call.1
= control target key start
LH: loop header
LB: loop body
LE: loop exit
PB: predicated region body
PF: predicated region fallthrough
CT: control target
= control target key end

     0   :  { %6 = vsyncpa [#allocation3], 0  ;;  %s292_s0 = inlined_call_operand.hbm [shape: f32[2,128], index: 0, kind: input, shape index: {}]   ;;  %s293_s1 = inlined_call_operand.hbm [shape: f32[8,128], index: 1, kind: output, shape index: {}]  }
   0x1   :  { %7 = vsyncpa [#allocation4], 0  ;;  %s229_s6 = smov [#allocation2]   ;;  %s181_s10 = scalar_lea.hbm %s292_s0, 32 }
   0x2   :  { %s14_s7 = sshll.u32 %s229_s6, 4  ;;  %p182_p0 = scmp.ne.s32.totalorder %s292_s0, %s181_s10  ;;  %s15_s7 = int_to_ptr.vmem [resolvable:$true] %s14_s7 }
   0x3   :  { %p185_p1 = scmp.lt.u32.totalorder %s181_s10, %s292_s0 }
   0x5   :  { %p187_p2 = pnand %p185_p1, %p182_p0 }
   0x7   :  { %190 = shalt.err (!%p187_p2)
}
   0x8   :  { %s191_s15 = scalar_lea.vmem %s15_s7, 32  ;;  %p196_p4 = scmp.lt.s32.totalorder %s15_s7, %s15_s7 }
   0x9   :  { %p192_p3 = scmp.ne.s32.totalorder %s15_s7, %s191_s15  ;;  %p197_p5 = scmp.lt.s32.totalorder %s191_s15, %s191_s15 }
   0xb   :  { %p198_p6 = por %p197_p5, %p196_p4 }
   0xd   :  { %p199_p7 = pnand %p198_p6, %p192_p3 }
   0xf   :  { %202 = shalt.err (!%p199_p7)
}
  0x10   :  { %17 = dma.hbm_to_vmem [thread:$0]  %s292_s0, 32, %s15_s7, [#allocation3]  }
  0x11   :  { %225 = dma.done.wait [#allocation3], 32  }
  0x12   :  { %226 = vsyncadd [#allocation3], 4294967264  ;;  %v28_v0 = vlaneseq  ;;  %v21_v4 = vld [vmem:[#allocation2] sm:$0x1]  ;;  %v22_v5 = vld [vmem:[#allocation2 + $0x1] sm:$0x1] }
  0x13   :  { %v26_v6 = vmul.f32 0.0, %v21_v4  ;;  %v230_v23 = vmov 683565275   ;;  %v231_v25 = vmov 2475754826   ;;  %s236_s0 = smov [#allocation5]  }
  0x14   :  { %v29_v1 = vshrl.u32 %v28_v0, 7  ;;  %v232_v27 = vmov 2131351028   ;;  %v233_v29 = vmov 2102212464   ;;  %s152_s18 = sshll.u32 %s236_s0, 4  ;;  %s153_s18 = int_to_ptr.vmem [resolvable:$true] %s152_s18 }
  0x15   :  { %v27_v8 = vadd.f32 %v26_v6, %v22_v5  ;;  %v234_v31 = vmov 920167782   ;;  %v235_v38 = vmov 1326507024   ;;  %s203_s19 = scalar_lea.vmem %s153_s18, 128  ;;  %p208_p9 = scmp.lt.s32.totalorder %s153_s18, %s153_s18 }
  0x16   :  { %v33_v2 = vsub.s32 0, %v29_v1  ;;  %v30_v3 = vcvt.s32.f32 %v29_v1  ;;  %p204_p8 = scmp.ne.s32.totalorder %s153_s18, %s203_s19  ;;  %p209_p10 = scmp.lt.s32.totalorder %s203_s19, %s203_s19 }
  0x18   :  { %v34_v7 = vrot.slane %v21_v4, %v33_v2  ;;  %v39_v10 = vrot.slane %v27_v8, %v33_v2  ;;  %p210_p11 = por %p209_p10, %p208_p9 }
  0x1a   :  { %v35_v9 = vmul.f32 %v34_v7, %v30_v3  ;;  %p211_p12 = pnand %p210_p11, %p204_p8 }
  0x1c   :  { %v259_v11 = vadd.f32 %v39_v10, %v35_v9 }
  0x1e   :  { %v44_v12 = vand.u32 2139095040, %v259_v11  ;;  %v41_v14 = vand.u32 2147483647, %v259_v11  ;;  %vm43_vm7 = vcmp.lt.s32.totalorder %v259_v11, 0  ;;  %vm133_vm12 = vweird.f32 %v259_v11 }
  0x20   :  { %v45_v13 = vshrl.u32 %v44_v12, 23  ;;  %v48_v17 = vand.u32 8388607, %v41_v14  ;;  %vm42_vm8 = vcmp.le.f32.partialorder %v41_v14, 0.7853982 }
  0x22   :  { %v161_v15 = vadd.s32 4294967169, %v45_v13  ;;  %v49_v20 = vor.u32 8388608, %v48_v17 }
  0x24   :  { %v51_v16 = vadd.s32 1, %v161_v15  ;;  %v89_v40 = vshll.u32 %v49_v20, 8 }
  0x26   :  { %vm52_vm0 = vcmp.gt.s32.totalorder %v51_v16, 0 }
  0x27   :  { %v53_v18 = vsel %vm52_vm0, %v51_v16, 0 }
  0x28   :  { %v55_v19 = vand.u32 31, %v53_v18  ;;  %v54_v21 = vshrl.u32 %v53_v18, 5 }
  0x2a   :  { %v56_v22 = vsub.s32 32, %v55_v19  ;;  %v58_v24 = vshll.u32 %v230_v23, %v55_v19  ;;  %v61_v26 = vshll.u32 %v231_v25, %v55_v19  ;;  %v64_v28 = vshll.u32 %v232_v27, %v55_v19 }
  0x2b   :  { %v67_v30 = vshll.u32 %v233_v29, %v55_v19  ;;  %v70_v32 = vshll.u32 %v234_v31, %v55_v19  ;;  %vm73_vm1 = vcmp.lt.s32.totalorder %v54_v21, 1  ;;  %vm76_vm2 = vcmp.lt.s32.totalorder %v54_v21, 4 }
  0x2c   :  { %v57_v33 = vshrl.u32 %v230_v23, %v56_v22  ;;  %v59_v34 = vshrl.u32 %v231_v25, %v56_v22  ;;  %v62_v35 = vshrl.u32 %v232_v27, %v56_v22  ;;  %v65_v36 = vshrl.u32 %v233_v29, %v56_v22 }
  0x2d   :  { %v68_v37 = vshrl.u32 %v234_v31, %v56_v22  ;;  %v71_v39 = vshrl.u32 %v235_v38, %v56_v22  ;;  %vm74_vm3 = vcmp.lt.s32.totalorder %v54_v21, 2  ;;  %vm75_vm4 = vcmp.lt.s32.totalorder %v54_v21, 3 }
  0x2e   :  { %v60_v41 = vor.u32 %v59_v34, %v58_v24  ;;  %v63_v42 = vor.u32 %v62_v35, %v61_v26  ;;  %v66_v43 = vor.u32 %v65_v36, %v64_v28 }
  0x2f   :  { %v69_v44 = vor.u32 %v68_v37, %v67_v30  ;;  %v72_v45 = vor.u32 %v71_v39, %v70_v32 }
  0x30   :  { %v77_v46 = vsel %vm73_vm1, %v57_v33, %v60_v41  ;;  %v78_v47 = vsel %vm76_vm2, %v66_v43, 2102212464  ;;  %v81_v48 = vsel %vm73_vm1, %v60_v41, %v63_v42  ;;  %v85_v49 = vsel %vm73_vm1, %v63_v42, %v66_v43 }
  0x31   :  { %v79_v50 = vsel %vm75_vm4, %v63_v42, %v78_v47  ;;  %v82_v51 = vsel %vm76_vm2, %v69_v44, 920167782  ;;  %v86_v52 = vsel %vm76_vm2, %v72_v45, 1326507024 }
  0x32   :  { %v83_v53 = vsel %vm75_vm4, %v66_v43, %v82_v51  ;;  %v87_v54 = vsel %vm75_vm4, %v69_v44, %v86_v52  ;;  %v80_v55 = vsel %vm74_vm3, %v77_v46, %v79_v50 }
  0x33   :  { %v84_v56 = vsel %vm74_vm3, %v81_v48, %v83_v53  ;;  %v88_v57 = vsel %vm74_vm3, %v85_v49, %v87_v54  ;;  %v96_v62 = vmul.u32 %v89_v40, %v80_v55 }
  0x34   :  { %v265_v58 = vmul.u32.u64.low %v89_v40, %v88_v57  ;;  %v266_v59 = vmul.u32.u64.high %v89_v40, %v88_v57, %v265_v58  ;;  %v268_v60 = vmul.u32.u64.low %v89_v40, %v84_v56  ;;  %v269_v61 = vmul.u32.u64.high %v89_v40, %v84_v56, %v268_v60 }
  0x36   :  { %vm98_vm5 = vc.u32 %v266_v59, %v268_v60  ;;  %v99_v63 = vadd.s32 1, %v269_v61  ;;  %v97_v10 = vadd.s32 %v268_v60, %v266_v59 }
  0x38   :  { %v100_v0 = vsel %vm98_vm5, %v99_v63, %v269_v61 }
  0x39   :  { %v101_v1 = vadd.s32 %v100_v0, %v96_v62 }
  0x3b   :  { %v102_v2 = vadd.s32 536870912, %v101_v1 }
  0x3d   :  { %v103_v3 = vshrl.u32 %v102_v2, 30 }
  0x3f   :  { %v104_v4 = vshll.u32 %v103_v3, 30  ;;  %v127_v24 = vsub.s32 4, %v103_v3 }
  0x41   :  { %v105_v5 = vsub.s32 %v101_v1, %v104_v4  ;;  %v128_v27 = vsel %vm43_vm7, %v127_v24, %v103_v3 }
  0x42   :  { %v130_v30 = vsel %vm42_vm8, 0, %v128_v27 }
  0x43   :  { %v107_v6 = vsub.s32 0, %v105_v5  ;;  %v134_v31 = vadd.s32 3, %v130_v30 }
  0x45   :  { %v162_v7 = vmin.u32 %v107_v6, %v105_v5  ;;  %v135_v32 = vand.u32 3, %v134_v31 }
  0x47   :  { %v109_v8 = vclz %v162_v7  ;;  %vm140_vm9 = vcmp.eq.s32.totalorder %v135_v32, 2  ;;  %vm137_vm10 = vcmp.eq.s32.totalorder %v135_v32, 0  ;;  %vm136_vm11 = vcmp.lt.s32.totalorder %v135_v32, 2 }
  0x49   :  { %v163_v9 = vadd.s32 4294967294, %v109_v8 }
  0x4b   :  { %vm164_vm6 = vcmp.lt.s32.totalorder %v163_v9, 0 }
  0x4c   :  { %v112_v12 = vsel %vm164_vm6, 0, %v163_v9 }
  0x4d   :  { %v113_v13 = vsub.s32 32, %v112_v12  ;;  %v114_v15 = vshll.u32 %v105_v5, %v112_v12  ;;  %v117_v16 = vsub.s32 4294967266, %v112_v12 }
  0x4f   :  { %v115_v17 = vshrl.u32 %v97_v10, %v113_v13  ;;  %v118_v18 = vadd.s32 127, %v117_v16 }
  0x51   :  { %v116_v19 = vor.u32 %v115_v17, %v114_v15  ;;  %v119_v20 = vshll.u32 %v118_v18, 23 }
  0x53   :  { %v120_v21 = vor.u32 4788187, %v119_v20  ;;  %v123_v22 = vcvt.s32.f32 %v116_v19 }
  0x55   :  { %v121_v23 = vand.u32 2147483647, %v120_v21 }
  0x57   :  { %v124_v25 = vmul.f32 %v123_v22, %v121_v23 }
  0x59   :  { %v125_v26 = vxor.u32 2147483648, %v124_v25 }
  0x5b   :  { %v126_v28 = vsel %vm43_vm7, %v125_v26, %v124_v25 }
  0x5c   :  { %v129_v29 = vsel %vm42_vm8, %v259_v11, %v126_v28 }
  0x5d   :  { %177 = vcosq.f32 %v129_v29 }
  0x5e   :  { %179 = vsinq.f32 %v129_v29 }
  0x67   :  { %v178_v33 = vpop.eup %177 }
  0x68   :  { %v180_v34 = vpop.eup %179  ;;  %v141_v35 = vxor.u32 2147483648, %v178_v33 }
  0x69   :  { %v138_v36 = vxor.u32 2147483648, %v180_v34 }
  0x6a   :  { %v142_v14 = vsel %vm140_vm9, %v141_v35, %v180_v34 }
  0x6b   :  { %v139_v37 = vsel %vm137_vm10, %v178_v33, %v138_v36 }
  0x6c   :  { %v143_v38 = vsel %vm136_vm11, %v139_v37, %v142_v14 }
  0x6d   :  { %v144_v39 = vsel %vm133_vm12, nan, %v143_v38 }
  0x6e   :  { %145 = vst [vmem:[#allocation5] sm:$0xff] %v144_v39 }
  0x6f   :  { %214 = shalt.err (!%p211_p12)
}
  0x70   :  { %s215_s22 = scalar_lea.hbm %s293_s1, 128 }
  0x71   :  { %p216_p13 = scmp.ne.s32.totalorder %s293_s1, %s215_s22  ;;  %p219_p0 = scmp.lt.u32.totalorder %s215_s22, %s293_s1 }
  0x73   :  { %p221_p1 = pnand %p219_p0, %p216_p13 }
  0x75   :  { %224 = shalt.err (!%p221_p1)
}
  0x76   :  { %155 = dma.vmem_to_hbm [thread:$0]  %s153_s18, 128, %s293_s1, [#allocation4]  }
  0x77   :  { %227 = dma.done.wait [#allocation4], 128  }
  0x78   :  { %228 = vsyncadd [#allocation4], 4294967168 }
  0x79   :  { %159 = vsyncpa [#allocation3], 1 }
  0x7a   :  { %160 = vsyncpa [#allocation4], 1 }

</bundles_post_ra>
